<compile_context>
chip_gen: v7x
topology: tpu7x:2x2x1
jax: 0.10.0
libtpu: 0.0.40
codegen_flags: <defaults>
</compile_context>

<pallas_src>
import math
import functools

import jax
import jax.numpy as jnp
import numpy as np
from jax import lax
from jax.experimental import pallas as pl
from jax.experimental.pallas import tpu as pltpu


def _data_embedding_kernel(x_ref, w_ref, pe_ref, o_ref):
    # x_ref : (1, L, C)  full sequence of the current batch element
    # w_ref : (3, C, D)  conv taps; tap k multiplies x[(l-1+k) mod L]
    # pe_ref: (TL, D)    positional-embedding tile (block index constant over batch -> DMA elided)
    # o_ref : (1, TL, D)
    L = x_ref.shape[1]
    TL = o_ref.shape[1]

    x_cur = x_ref[0]                                     # (L, C)
    # circular neighbours, built on the XLU (free slot); matches jnp.roll semantics:
    #   x_prev[l] = x[(l-1) mod L],  x_next[l] = x[(l+1) mod L]
    x_prev = pltpu.roll(x_cur, shift=1, axis=0)
    x_next = pltpu.roll(x_cur, shift=L - 1, axis=0)

    if TL != L:  # static (trace-time) branch: only emitted when the sequence is row-tiled
        start = pl.multiple_of(pl.program_id(0) * TL, TL)   # TL % 8 == 0 in this path
        x_prev = lax.dynamic_slice_in_dim(x_prev, start, TL, axis=0)
        x_cur = lax.dynamic_slice_in_dim(x_cur, start, TL, axis=0)
        x_next = lax.dynamic_slice_in_dim(x_next, start, TL, axis=0)

    acc = jnp.dot(x_prev, w_ref[0], preferred_element_type=jnp.float32)
    acc += jnp.dot(x_cur, w_ref[1], preferred_element_type=jnp.float32)
    acc += jnp.dot(x_next, w_ref[2], preferred_element_type=jnp.float32)
    o_ref[0] = (acc + pe_ref[...]).astype(o_ref.dtype)


def _pick_row_tile(L, D, *, max_tile=1024, budget_bytes=24 * 1024 * 1024):
    """Row tile along the sequence.

    Returns either L itself (block == full dim, always legal) or a multiple of 8 that
    divides L, sized so the double-buffered (pe + out) tiles fit the VMEM budget
    (budget chosen to be safe on v7x's 64 MiB VMEM while still >= 512 rows for d_model
    up to ~1.5k, i.e. near the HBM roofline on v5e/v6e/v7x).
    """
    bytes_per_row = 2 * 2 * D * 4            # (pe + out) tiles, double-buffered, f32
    cap = min(max_tile, max(8, budget_bytes // bytes_per_row))
    if L <= cap:
        return L
    best = 0
    for t in range(8, cap + 1, 8):
        if L % t == 0:
            best = t
    if best:
        return best
    # TODO(synk): pathological L (e.g. a large prime) falls back to a single full-length
    # tile instead of emitting a masked tail; fine for correctness, not for huge L.
    return L


def data_embedding(x, conv_weight, pe_table, *, max_row_tile=1024):
    """x: (B, L, C) f32; conv_weight: (D, C, 3) f32; pe_table: (max_len, D) f32 -> (B, L, D)."""
    B, L, C = x.shape
    D = conv_weight.shape[0]

    x = x.astype(jnp.float32)
    # (D, C, 3) -> (3, C, D): w_kcd[k, c, d] = conv_weight[d, c, k]
    w_kcd = jnp.transpose(conv_weight, (2, 1, 0)).astype(jnp.float32)
    pe = pe_table[:L, :].astype(jnp.float32)                     # (L, D)

    TL = _pick_row_tile(L, D, max_tile=max_row_tile)
    n_ltiles = L // TL if L % TL == 0 else 1

    # Honest, mem-bound cost estimate for the chosen grid:
    #   x re-fetched every step (batch is the inner grid axis), weights resident,
    #   PE fetched once (block index constant over batch), output written once.
    cost = pl.CostEstimate(
        flops=2 * B * L * (3 * C) * D,
        transcendentals=0,
        bytes_accessed=4 * (n_ltiles * B * L * C + 3 * C * D + L * D + B * L * D),
    )

    # VMEM: double-buffered x block + pe tile + out tile + weights, with headroom;
    # clamp to <= 48 MiB so the same budget is safe on v7x's 64 MiB VMEM.
    need = 2 * (L * C + 2 * TL * D + 3 * C * D) * 4
    vmem_limit = min(max(2 * need, 32 * 1024 * 1024), 48 * 1024 * 1024)
    vmem_limit = max(vmem_limit, need + (4 << 20))

    out = pl.pallas_call(
        _data_embedding_kernel,
        out_shape=jax.ShapeDtypeStruct((B, L, D), jnp.float32),
        grid_spec=pltpu.PrefetchScalarGridSpec(
            num_scalar_prefetch=0,
            # sequence tiles OUTER, batch INNER -> PE block index constant across
            # consecutive steps (re-DMA elided); B carries the v7x 2-TC split.
            grid=(n_ltiles, B),
            in_specs=[
                pl.BlockSpec((1, L, C), lambda l, b: (b, 0, 0)),      # x (full seq / batch)
                pl.BlockSpec((3, C, D), lambda l, b: (0, 0, 0)),      # conv taps (resident)
                pl.BlockSpec((TL, D), lambda l, b: (l, 0)),           # PE tile
            ],
            out_specs=pl.BlockSpec((1, TL, D), lambda l, b: (b, l, 0)),
        ),
        compiler_params=pltpu.CompilerParams(
            dimension_semantics=("parallel", "parallel"),
            vmem_limit_bytes=int(vmem_limit),
        ),
        cost_estimate=cost,
    )(x, w_kcd, pe)
    return out
    # Dropout(p=0.0) is identity; nothing to emit.


def make_positional_embedding(d_model, max_len=5000):
    position = jnp.arange(0, max_len, dtype=jnp.float32)[:, None]         # (max_len, 1)
    div_term = jnp.exp(jnp.arange(0, d_model, 2, dtype=jnp.float32)
                       * (-(math.log(10000.0) / d_model)))                # (d_model/2,)
    pe = jnp.zeros((max_len, d_model), dtype=jnp.float32)
    pe = pe.at[:, 0::2].set(jnp.sin(position * div_term))
    pe = pe.at[:, 1::2].set(jnp.cos(position * div_term))
    return pe


def make_conv_weight(key, c_in, d_model, kernel_size=3):
    # kaiming_normal_(mode='fan_in', nonlinearity='leaky_relu') on Conv1d weight
    fan_in = c_in * kernel_size
    gain = math.sqrt(2.0 / (1.0 + 0.01 ** 2))
    std = gain / math.sqrt(fan_in)
    return std * jax.random.normal(key, (d_model, c_in, kernel_size), dtype=jnp.float32)


def _reference(x, conv_weight, pe_table):
    # pure-JAX reference: circular conv1d (k=3, pad=1, no bias) + positional embedding
    B, L, C = x.shape
    x_pad = jnp.concatenate([x[:, -1:, :], x, x[:, :1, :]], axis=1)       # (B, L+2, C)
    w_kcd = jnp.transpose(conv_weight, (2, 1, 0))                          # (3, C, D)
    out = (jnp.einsum('blc,cd->bld', x_pad[:, 0:L], w_kcd[0])
           + jnp.einsum('blc,cd->bld', x_pad[:, 1:L + 1], w_kcd[1])
           + jnp.einsum('blc,cd->bld', x_pad[:, 2:L + 2], w_kcd[2]))
    return out + pe_table[None, :L, :]


if __name__ == "__main__":
    key = jax.random.PRNGKey(0)
    k_x, k_w = jax.random.split(key)

    B, L, C_IN, D_MODEL = 2, 8, 4, 32
    x = jax.random.normal(k_x, (B, L, C_IN), dtype=jnp.float32)
    conv_w = make_conv_weight(k_w, C_IN, D_MODEL)
    pe_table = make_positional_embedding(D_MODEL)

    out = jax.block_until_ready(data_embedding(x, conv_w, pe_table))
    ref = jax.block_until_ready(_reference(x, conv_w, pe_table))

    assert out.shape == (B, L, D_MODEL)
    np.testing.assert_allclose(np.asarray(out), np.asarray(ref), rtol=1e-5, atol=1e-5)

    print("KERNEL_OK")
</pallas_src>

<mosaic_0001>
module attributes {stable_mosaic.version = 11 : i64} {
  func.func @_data_embedding_kernel(%arg0: i32, %arg1: i32, %arg2: memref<1x8x4xf32, #tpu.memory_space<vmem>>, %arg3: memref<3x4x32xf32, #tpu.memory_space<vmem>>, %arg4: memref<8x32xf32, #tpu.memory_space<vmem>>, %arg5: memref<1x8x32xf32, #tpu.memory_space<vmem>>) attributes {dimension_semantics = [#tpu.dimension_semantics<parallel>, #tpu.dimension_semantics<parallel>], iteration_bounds = array<i64: 1, 2>, scalar_prefetch = 0 : i64, scratch_operands = 0 : i64, tpu.core_type = #tpu.core_type<tc>, window_params = [{transform_indices = @transform_0, window_bounds = array<i64: 1, 8, 4>}, {pipeline_mode = #tpu.pipeline_mode<synchronous>, transform_indices = @transform_1, window_bounds = array<i64: 3, 4, 32>}, {transform_indices = @transform_2, window_bounds = array<i64: 8, 32>}, {transform_indices = @transform_3, window_bounds = array<i64: 1, 8, 32>}]} {
    %c0 = arith.constant 0 : index
    %c0_0 = arith.constant 0 : index
    %c0_1 = arith.constant 0 : index
    %0 = vector.load %arg2[%c0, %c0_0, %c0_1] : memref<1x8x4xf32, #tpu.memory_space<vmem>>, vector<1x8x4xf32>
    %1 = vector.shape_cast %0 : vector<1x8x4xf32> to vector<8x4xf32>
    %c1_i32 = arith.constant 1 : i32
    %2 = tpu.dynamic_rotate %1 by %c1_i32 dim 0 : vector<8x4xf32>, i32 -> vector<8x4xf32>
    %c7_i32 = arith.constant 7 : i32
    %3 = tpu.dynamic_rotate %1 by %c7_i32 dim 0 : vector<8x4xf32>, i32 -> vector<8x4xf32>
    %c0_2 = arith.constant 0 : index
    %c0_3 = arith.constant 0 : index
    %c0_4 = arith.constant 0 : index
    %4 = vector.load %arg3[%c0_2, %c0_3, %c0_4] : memref<3x4x32xf32, #tpu.memory_space<vmem>>, vector<1x4x32xf32>
    %5 = vector.shape_cast %4 : vector<1x4x32xf32> to vector<4x32xf32>
    %cst = arith.constant dense<0.000000e+00> : vector<8x32xf32>
    %6 = tpu.matmul %2, %5, %cst {dimension_numbers = #tpu.dot_dimension_numbers<[1], [0], [0], [1], [0, 0, 1, 1], [], []>} : vector<8x4xf32>, vector<4x32xf32>, vector<8x32xf32> -> vector<8x32xf32>
    %c1 = arith.constant 1 : index
    %c0_5 = arith.constant 0 : index
    %c0_6 = arith.constant 0 : index
    %7 = vector.load %arg3[%c1, %c0_5, %c0_6] : memref<3x4x32xf32, #tpu.memory_space<vmem>>, vector<1x4x32xf32>
    %8 = vector.shape_cast %7 : vector<1x4x32xf32> to vector<4x32xf32>
    %cst_7 = arith.constant dense<0.000000e+00> : vector<8x32xf32>
    %9 = tpu.matmul %1, %8, %cst_7 {dimension_numbers = #tpu.dot_dimension_numbers<[1], [0], [0], [1], [0, 0, 1, 1], [], []>} : vector<8x4xf32>, vector<4x32xf32>, vector<8x32xf32> -> vector<8x32xf32>
    %10 = arith.addf %6, %9 : vector<8x32xf32>
    %c2 = arith.constant 2 : index
    %c0_8 = arith.constant 0 : index
    %c0_9 = arith.constant 0 : index
    %11 = vector.load %arg3[%c2, %c0_8, %c0_9] : memref<3x4x32xf32, #tpu.memory_space<vmem>>, vector<1x4x32xf32>
    %12 = vector.shape_cast %11 : vector<1x4x32xf32> to vector<4x32xf32>
    %cst_10 = arith.constant dense<0.000000e+00> : vector<8x32xf32>
    %13 = tpu.matmul %3, %12, %cst_10 {dimension_numbers = #tpu.dot_dimension_numbers<[1], [0], [0], [1], [0, 0, 1, 1], [], []>} : vector<8x4xf32>, vector<4x32xf32>, vector<8x32xf32> -> vector<8x32xf32>
    %14 = arith.addf %10, %13 : vector<8x32xf32>
    %c0_11 = arith.constant 0 : index
    %c0_12 = arith.constant 0 : index
    %15 = vector.load %arg4[%c0_11, %c0_12] : memref<8x32xf32, #tpu.memory_space<vmem>>, vector<8x32xf32>
    %16 = arith.addf %14, %15 : vector<8x32xf32>
    %c0_13 = arith.constant 0 : index
    %c0_14 = arith.constant 0 : index
    %c0_15 = arith.constant 0 : index
    %17 = vector.load %arg5[%c0_13, %c0_14, %c0_15] : memref<1x8x32xf32, #tpu.memory_space<vmem>>, vector<1x8x32xf32>
    %18 = vector.shape_cast %17 : vector<1x8x32xf32> to vector<8x32xf32>
    %19 = vector.shape_cast %16 : vector<8x32xf32> to vector<1x8x32xf32>
    tpu.vector_store %arg5[%c0_13, %c0_14, %c0_15], %19 {strides = array<i32>} : memref<1x8x32xf32, #tpu.memory_space<vmem>>, vector<1x8x32xf32>,
    return
  }
  func.func @transform_0(%arg0: i32, %arg1: i32) -> (i32, i32, i32) {
    %c0_i32 = arith.constant 0 : i32
    %c0_i32_0 = arith.constant 0 : i32
    %c0_i32_1 = arith.constant 0 : i32
    return %arg1, %c0_i32, %c0_i32_0 : i32, i32, i32
  }
  func.func @transform_1(%arg0: i32, %arg1: i32) -> (i32, i32, i32) {
    %c0_i32 = arith.constant 0 : i32
    %c0_i32_0 = arith.constant 0 : i32
    %c0_i32_1 = arith.constant 0 : i32
    %c0_i32_2 = arith.constant 0 : i32
    return %c0_i32, %c0_i32_0, %c0_i32_1 : i32, i32, i32
  }
  func.func @transform_2(%arg0: i32, %arg1: i32) -> (i32, i32) {
    %c0_i32 = arith.constant 0 : i32
    %c0_i32_0 = arith.constant 0 : i32
    return %arg0, %c0_i32 : i32, i32
  }
  func.func @transform_3(%arg0: i32, %arg1: i32) -> (i32, i32, i32) {
    %c0_i32 = arith.constant 0 : i32
    %c0_i32_0 = arith.constant 0 : i32
    return %arg1, %arg0, %c0_i32 : i32, i32, i32
  }
}

</mosaic_0001>

<bundles_post_ra>
// kernel: tpu_custom_call.1
= control target key start
LH: loop header
LB: loop body
LE: loop exit
PB: predicated region body
PF: predicated region fallthrough
CT: control target
= control target key end

     0   :  { %8 = vsyncpa [#allocation3], 0  ;;  %s869_s0 = inlined_call_operand.vmem [shape: f32[2,8,4], index: 0, kind: input, shape index: {}]   ;;  %s870_s1 = inlined_call_operand.vmem [shape: f32[3,4,32], index: 1, kind: input, shape index: {}]   ;;  %s871_s2 = inlined_call_operand.vmem [shape: f32[8,32], index: 2, kind: input, shape index: {}]   ;;  %s872_s3 = inlined_call_operand.hbm [shape: f32[2,8,32], index: 3, kind: output, shape index: {}]  }
   0x1   :  { %10 = vsyncpa [#allocation3 + $0x1], 0  ;;  %s739_s12 = smov 0   ;;  %s741_s13 = smov 0  }
   0x2   :  { %s743_s14 = smov 0   ;;  %s745_s15 = smov 0  }
   0x3   :  { %s747_s16 = smov 0   ;;  %s749_s17 = smov 0  }
   0x4 LB: > { %s538_s18 = sadd.s32 4294967295, %s714_s17   ;;  %s539_s19 = sadd.s32 4294967294, %s714_s17   ;;  %s714_s17 = sphi %s749_s17, %s16_s17   ;;  %s710_s16 = sphi %s747_s16, %s879_s16   ;;  %s706_s15 = sphi %s745_s15, %s878_s15   ;;  %s702_s14 = sphi %s743_s14, %s877_s14   ;;  %s698_s13 = sphi %s741_s13, %s876_s13   ;;  %s694_s12 = sphi %s739_s12, %s875_s12  }
   0x5   : > { %s25_s20 = sadd.s32 1, %s710_s16  ;;  %s110_s21 = sadd.s32 1, %s702_s14 }
   0x6   : > { %p26_p0 = scmp.ge.s32.totalorder %s25_s20, 2  ;;  %p120_p1 = scmp.ne.s32.totalorder %s702_s14, %s698_s13 }
   0x7   : > { %p121_p2 = scmp.eq.s32.totalorder %s538_s18, 1  ;;  %p126_p3 = scmp.ne.s32.totalorder %s698_s13, %s694_s12 }
   0x8   : > { %s881_s20 = smov (%p26_p0, %s25_s20), 0  ;;  %p127_p5 = scmp.eq.s32.totalorder %s539_s19, 1 }
   0x9   : > { %p779_p4 = por %p121_p2, %p120_p1  ;;  %s105_s23 = ssub.s32 %s710_s16, %s881_s20 }
   0xa   : > { %p543_p6 = scmp.ge.s32.totalorder %s714_s17, 1  ;;  %p108_p7 = scmp.eq.s32.totalorder %s105_s23, 0 }
   0xb   : > { %p786_p8 = por %p127_p5, %p126_p3  ;;  %p162_p9 = scmp.lt.s32.totalorder %s714_s17, 3 }
   0xc   : > { %s792_s25 = scalar_select %p108_p7, %s702_s14, %s110_s21  }
   0xd   : > { %p163_p10 = pnand %p543_p6, %p162_p9 }
   0xe   : > { %v546_v0 = vld [vmem:[%s870_s1 + $0x4] sm:$0xf] (!%p163_p10)  ;;  %vm207_vm0 = vcmask (!%p163_p10), 1043456   ;;  %p189_p11 = scmp.lt.s32.totalorder (!%p163_p10), %s706_s15, 1  ;;  %v716_v1 = vmov (!%p163_p10), 0.0   ;;  %vm717_vm1 = vmmov (!%p163_p10), 0  }
   0xf   : > { %166 = sbr.rel (%p163_p10) target bundleno = 261 (0x105), region = 32  ;;  %564 = vmatprep.subr.mxu0 (!%p163_p10), %v716_v1  ;;  %566 = vmatprep.mubr.msk.f32.mxu0 (!%p163_p10), %vm717_vm1, %v716_v1  ;;  %v200_v2 = vld [vmem:[%s870_s1] sm:$0xf] (!%p163_p10)  ;;  %vm203_vm2 = vcmask (!%p163_p10), 31744   ;;  %v551_v3 = vld [vmem:[%s870_s1 + $0x8] sm:$0xf] (!%p163_p10) }
  0x10   : > { %565 = vmatpush3.msk.msra.mxu0 (!%p163_p10), %vm207_vm0, %v546_v0  ;;  %569 = vmatprep.subr.mxu1 (!%p163_p10), %v716_v1  ;;  %s186_s10 = sand.u32 (!%p163_p10), 1, %s698_s13   ;;  %v436_v13 = vld [vmem:[%s871_s2] sm:$0xff] (!%p163_p10)  ;;  %s555_s21 = sshll.u32 (!%p163_p10), %s706_s15, 7  ;;  %vm438_vm3 = vcmask (!%p163_p10), 261120  }
  0x11   : > { %574 = vmatprep.subr.mxu0 (!%p163_p10), %v716_v1  ;;  %570 = vmatpush3.msk.msra.mxu1 (!%p163_p10), %vm207_vm0, %v200_v2  ;;  %s544_s11 = sshll.u32 (!%p163_p10), %s186_s10, 3  ;;  %s822_s29 = scalar_lea.hbm (!%p163_p10), %s872_s3, %s555_s21 }
  0x12   : > { %571 = vmatprep.mubr.msk.f32.mxu1 (!%p163_p10), %vm717_vm1, %v716_v1  ;;  %s188_s23 = scalar_lea.vmem (!%p163_p10), [#allocation2], %s544_s11 }
  0x13   : > { %s455_s26 = sshll.u32 (!%p163_p10), %s188_s23, 4  ;;  %s824_s26 = int_to_ptr.vmem [resolvable:$true] %s455_s26 }
  0x16   : > { %s190_s30 = scalar_select %p189_p11, %s706_s15, 1 }
  0x17   : > { %s718_s15 = smov [#allocation2]  }
  0x18   : > { %s545_s4 = sshll.u32 %s190_s30, 3  ;;  %s441_s30 = scalar_lea.sflag [#allocation3], %s186_s10 }
  0x19   : > { %s192_s7 = scalar_lea.vmem %s869_s0, %s545_s4  ;;  %s636_s4 = scalar_lea.vmem %s824_s26, 128 }
  0x1a   : > { %v197_v4 = vld [vmem:[%s192_s7] sm:$0xff]  ;;  %p637_p12 = scmp.ne.s32.totalorder %s824_s26, %s636_s4  ;;  %s640_s5 = sshll.u32 %s718_s15, 4  ;;  %s641_s5 = int_to_ptr.vmem [resolvable:$false] %s640_s5 }
  0x1b   : > { %v198_v5 = vrot.slane %v197_v4, 7  ;;  %v199_v6 = vrot.slane %v197_v4, 1  ;;  %567 = vmatmul.mubr.msk.f32.vlgmr.msra.gmra.mrb[0].mxu0 %vm203_vm2, %v197_v4  ;;  %s642_s6 = scalar_lea.vmem %s641_s5, 256  ;;  %p643_p1 = scmp.lt.s32.totalorder %s824_s26, %s641_s5 }
  0x1c   : > { %575 = vmatpush3.msk.msra.mxu0 %vm207_vm0, %v551_v3  ;;  %576 = vmatprep.mubr.msk.f32.mxu0 %vm717_vm1, %v716_v1  ;;  %p638_p13 = pnand %p637_p12, %p779_p4  ;;  %p644_p2 = scmp.lt.s32.totalorder %s642_s6, %s636_s4 }
  0x1d   : > { %572 = vmatmul.mubr.msk.f32.vlgmr.msra.gmra.mrb[0].mxu1 %vm203_vm2, %v198_v5 }
  0x1e   : > { %p639_p0 = pneg %p638_p13  ;;  %p645_p3 = por %p644_p2, %p643_p1 }
  0x1f   : > { %577 = vmatmul.mubr.msk.f32.vlgmr.msra.gmra.mrb[2].mxu0 %vm203_vm2, %v199_v6 }
  0x20   : > { %p646_p5 = pnand %p645_p3, %p639_p0 }
  0xee   : > { %v277_v7 = vpop.f32.mrb[0].mxu0 }
  0xef   : > { %v568_v8 = vpop.f32.mrb[1].mxu0 }
  0xf0   : > { %v353_v9 = vpop.f32.mrb[0].mxu1 }
  0xf1   : > { %v354_v10 = vadd.f32 %v353_v9, %v277_v7  ;;  %v573_v11 = vpop.f32.mrb[1].mxu1 }
  0xf2   : > { %v431_v12 = vpop.f32.mrb[2].mxu0 }
  0xf3   : > { %v435_v14 = vadd.f32 %v431_v12, %v354_v10  ;;  %v578_v15 = vpop.f32.mrb[3].mxu0 }
  0xf5   : > { %v437_v16 = vadd.f32 %v436_v13, %v435_v14 }
  0xf7   : > { %439 = vst.msk [vmem:[%s188_s23] sm:$0xff] %vm438_vm3, %v437_v16 }
  0xf8   : > { %649 = shalt.err (!%p646_p5)
}
  0xf9   : > { %s650_s7 = scalar_lea.hbm %s822_s29, 128  ;;  %s654_s10 = scalar_lea.hbm %s872_s3, 256 }
  0xfa   : > { %p651_p6 = scmp.ne.s32.totalorder %s822_s29, %s650_s7  ;;  %p655_p10 = scmp.lt.u32.totalorder %s822_s29, %s872_s3 }
  0xfb   : > { %p656_p11 = scmp.lt.u32.totalorder %s654_s10, %s650_s7  ;;  %p658_p13 = scmp.lt.u32.totalorder %s650_s7, %s822_s29 }
  0xfc   : > { %p652_p7 = pnand %p651_p6, %p779_p4 }
  0xfd   : > { %p657_p12 = por %p656_p11, %p655_p10 }
  0xfe   : > { %p653_p9 = pneg %p652_p7 }
  0xff   : > { %p659_p0 = por %p658_p13, %p657_p12 }
 0x101   : > { %p660_p1 = pnand %p659_p0, %p653_p9 }
 0x103   : > { %663 = shalt.err (!%p660_p1)
}
 0x104   : > { %579 = dma.vmem_to_hbm [thread:$0]  (%p779_p4), %s824_s26, 128, %s822_s29, %s441_s30  }
 0x105 PF: > { %p585_p2 = scmp.ge.s32.totalorder %s714_s17, 2  ;;  %s467_s19 = sand.u32 1, %s694_s12  }
 0x106   : > { %s468_s21 = scalar_lea.sflag [#allocation3], %s467_s19 }
 0x107   : > { %p582_p3 = pnand %p585_p2, %p786_p8 }
 0x109   : > { %689 = dma.done.wait (!%p582_p3), %s468_s21, 128  }
 0x10a   : > { %691 = vsyncadd (!%p582_p3), %s468_s21, 4294967168  ;;  %s16_s17 = sadd.s32 1, %s714_s17   ;;  %s875_s12 = smov %s698_s13 }
 0x10b   : > { %p13_p5 = scmp.ge.s32.totalorder %s16_s17, 4   ;;  %s876_s13 = smov %s702_s14 }
 0x10c   : > { %s877_s14 = smov %s792_s25  ;;  %s878_s15 = smov %s710_s16 }
 0x10d   : > { %s879_s16 = smov %s881_s20  ;;  %15 = sbr.rel (!%p13_p5) target bundleno = 4 (0x4), region = 72 }
 0x114   :  { %473 = vsyncpa [#allocation3], 1 }
 0x115   :  { %475 = vsyncpa [#allocation3 + $0x1], 1 }

</bundles_post_ra>
